<compile_context>
chip_gen: v7x
topology: tpu7x:2x2x1
jax: 0.10.0
libtpu: 0.0.40
codegen_flags: <defaults>
</compile_context>

<pallas_src>
import functools

import jax
import jax.numpy as jnp
from jax.experimental import pallas as pl
from jax.experimental.pallas import tpu as pltpu

TEMPERATURE = 4.0
EPS = 1e-12                           # matches torch.nn.functional.normalize eps
TK_CAP = 32768                        # max lanes per streamed feature tile
TARGET_STEP_BYTES = 4 * 1024 * 1024   # aim for >= 4 MiB streamed feature bytes per grid step


def _round_up(x, m):
    return ((x + m - 1) // m) * m


def _vmem_capacity_bytes():
    try:
        return int(pltpu.get_tpu_info().vmem_capacity_bytes)
    except Exception:
        return 64 * 1024 * 1024       # conservative fallback (v7x per-core VMEM)


def _tensorcores_to_split():
    # v7x has 2 TensorCores per device; v5e/v6e have 1.
    # TODO(synk): v4/v5p megacore devices could also take the 2-way K split.
    try:
        kind = getattr(jax.devices()[0], "device_kind", "") or ""
        if "v7" in kind.lower():
            return 2
    except Exception:
        pass
    return 1


def _gram_kernel(t_feat_ref, s_feat_ref, gt_ref, gs_ref, *,
                 d_total: int, tk: int, mask_tail: bool):
    c = pl.program_id(0)
    k = pl.program_id(1)
    nk = pl.num_programs(1)

    # Per-core Gram accumulators live in the (resident) output blocks.
    @pl.when(k == 0)
    def _():
        gt_ref[...] = jnp.zeros_like(gt_ref)
        gs_ref[...] = jnp.zeros_like(gs_ref)

    def accumulate(tf, sf):
        # bf16 operands hit the MXU's native path on all of v5e/v6e/v7x (v7x has
        # no integer MXU, so bf16 is the portable fast path); accumulate in f32.
        tf = tf.astype(jnp.bfloat16)
        sf = sf.astype(jnp.bfloat16)
        dn = (((1,), (1,)), ((), ()))          # contract the feature dim: Z @ Z^T
        gt_ref[0] += jax.lax.dot_general(tf, tf, dn, preferred_element_type=jnp.float32)
        gs_ref[0] += jax.lax.dot_general(sf, sf, dn, preferred_element_type=jnp.float32)

    g = c * nk + k                             # logical global K-tile index
    if not mask_tail:
        # Steady state: no iota / selects on the hot path.
        accumulate(t_feat_ref[...], s_feat_ref[...])
    else:
        num_full = d_total // tk               # tiles that never need masking (static)

        @pl.when(g < num_full)
        def _():
            accumulate(t_feat_ref[...], s_feat_ref[...])

        # Ragged last tile and/or fully-out-of-range overhang tiles (uneven K
        # split across cores): mask by the *logical* column index so any stale
        # data in the clamped block contributes exactly 0.
        @pl.when(g >= num_full)
        def _():
            tf = t_feat_ref[...]
            sf = s_feat_ref[...]
            lane = jax.lax.broadcasted_iota(jnp.int32, tf.shape, 1)
            valid = (g * tk + lane) < d_total
            accumulate(jnp.where(valid, tf, jnp.zeros_like(tf)),
                       jnp.where(valid, sf, jnp.zeros_like(sf)))


def _finalize_kernel(gt_ref, gs_ref, s_logit_ref, t_logit_ref, tgt_ref, out_ref, *,
                     n_valid: int, batchmean: bool):
    # Reduce the per-core partial Grams (leading axis is 1 or 2 — tiny).
    g_t = jnp.sum(gt_ref[...], axis=0)
    g_s = jnp.sum(gs_ref[...], axis=0)

    # Row L1 normalization, matching torch.nn.functional.normalize(g, p=1, dim=1).
    # One-off finalize over B rows: exact divide (no approx reciprocal needed).
    g_t = g_t / jnp.maximum(jnp.sum(jnp.abs(g_t), axis=1, keepdims=True), EPS)
    g_s = g_s / jnp.maximum(jnp.sum(jnp.abs(g_s), axis=1, keepdims=True), EPS)
    spkd = jnp.sum((g_t - g_s) ** 2)

    # Post-matmul math stays in f32 (v5e VPU/EUP have no bf16 path).
    s = s_logit_ref[...].astype(jnp.float32)   # [Bp, C]
    t = t_logit_ref[...].astype(jnp.float32)   # [Bp, C]
    T = TEMPERATURE

    st = s * (1.0 / T)
    st = st - jnp.max(st, axis=1, keepdims=True)
    log_q = st - jnp.log(jnp.sum(jnp.exp(st), axis=1, keepdims=True))

    tt = t * (1.0 / T)
    tt = tt - jnp.max(tt, axis=1, keepdims=True)
    log_p = tt - jnp.log(jnp.sum(jnp.exp(tt), axis=1, keepdims=True))
    p = jnp.exp(log_p)

    kl = jnp.sum(p * (log_p - log_q))

    if batchmean:
        spkd = spkd * (1.0 / float(n_valid * n_valid))
        kl = kl * (1.0 / float(n_valid))
    # TODO(synk): reductions other than 'batchmean'/'sum' (e.g. 'none', 'mean') not supported.

    # Hard loss: mean cross-entropy on raw student logits; one-hot built in-kernel
    # from int32 targets (padded rows carry -1 -> all-zero row -> contribute 0).
    cls = jax.lax.broadcasted_iota(jnp.int32, s.shape, 1)
    onehot = (cls == tgt_ref[...]).astype(jnp.float32)
    s_sh = s - jnp.max(s, axis=1, keepdims=True)
    log_sm = s_sh - jnp.log(jnp.sum(jnp.exp(s_sh), axis=1, keepdims=True))
    ce = -jnp.sum(onehot * log_sm) * (1.0 / float(n_valid))

    out_ref[0, 0] = ce + spkd + (T * T) * kl


def spkd_loss(student_feature_map, teacher_feature_map, student_output,
              teacher_output, targets, reduction='batchmean'):
    B = teacher_feature_map.shape[0]
    C = student_output.shape[1]

    # Glue: flatten NCHW feature maps (row-major, matches torch.flatten(z, 1)).
    # Features keep their input dtype (bf16 inputs stream at half the HBM bytes);
    # the kernel casts matmul operands to bf16 and accumulates in f32.
    t_flat = teacher_feature_map.reshape(B, -1)
    s_flat = student_feature_map.reshape(B, -1)
    D = t_flat.shape[1]

    # Batch pad to full vreg packing: 8 sublanes for 4-byte dtypes, 16 for bf16,
    # 32 for int8/fp8. Padded rows contribute exactly 0 to every term.
    min_itemsize = min(jnp.dtype(a.dtype).itemsize
                       for a in (t_flat, s_flat, student_output, teacher_output))
    B_pad = _round_up(B, max(8, 32 // max(1, min_itemsize)))

    s_logits = student_output
    t_logits = teacher_output
    tgt = targets.astype(jnp.int32)
    if B_pad != B:
        pad = B_pad - B
        t_flat = jnp.pad(t_flat, ((0, pad), (0, 0)))
        s_flat = jnp.pad(s_flat, ((0, pad), (0, 0)))
        s_logits = jnp.pad(s_logits, ((0, pad), (0, 0)))
        t_logits = jnp.pad(t_logits, ((0, pad), (0, 0)))
        tgt = jnp.pad(tgt, ((0, pad),), constant_values=-1)
    tgt = tgt.reshape(B_pad, 1)

    feat_itemsize = max(jnp.dtype(t_flat.dtype).itemsize,
                        jnp.dtype(s_flat.dtype).itemsize)

    # ---- generation-aware VMEM budget & K-tile sizing (kernel is HBM-stream bound)
    vmem_cap = _vmem_capacity_bytes()
    # ~100 MiB usable on 128 MiB parts (v5e/v6e), ~50 MiB on v7x's 64 MiB/core.
    vmem_ceiling = int(min(int(vmem_cap * 0.78), 100 * 1024 * 1024))
    # Per-core Gram output blocks: 2 outputs x (assume 2 pipeline buffers) x f32.
    gram_bytes = 2 * 2 * B_pad * B_pad * 4
    # TODO(synk): for B_pad >~ 1500 on v7x the Gram blocks alone exceed VMEM; tiling
    # the Gram output with extra M/N grid axes would be required there.
    per_col_bytes = 2 * 2 * B_pad * feat_itemsize            # 2 features x 2 buffers
    feature_budget = max(vmem_ceiling - gram_bytes - (2 << 20), per_col_bytes * 128)
    tk_by_vmem = max(128, (feature_budget // per_col_bytes) // 128 * 128)
    # Aim for >= TARGET_STEP_BYTES of streamed feature bytes per grid step so the
    # ~0.35 us per-step pipeline overhead is amortized.
    tk_target = _round_up(max(128, TARGET_STEP_BYTES // (2 * B_pad * feat_itemsize)), 128)
    tk = max(128, min(tk_target, TK_CAP, tk_by_vmem))
    if D <= tk:
        tk = D                                                # single full-width tile
    num_k = -(-D // tk)

    # Split the K stream across TensorCores on multi-core chips (v7x): leading
    # "parallel" axis; each core accumulates its own partial Gram output block.
    nc = min(_tensorcores_to_split(), num_k)
    nkpc = -(-num_k // nc)                                    # K tiles per core
    mask_tail = (nc * nkpc * tk) != D                         # ragged tail / overhang tiles

    if nc * nkpc == num_k:
        feat_map = lambda c, k: (0, c * nkpc + k)
    else:
        # Overhang tiles from an uneven core split are clamped to the last real
        # block; the kernel zeroes them by logical column index.
        feat_map = lambda c, k: (0, jnp.minimum(c * nkpc + k, num_k - 1))

    stream_vmem = gram_bytes + per_col_bytes * tk + (1 << 20)
    stream_vmem_limit = int(min(max(stream_vmem + (4 << 20), 32 * 1024 * 1024),
                                max(vmem_ceiling, stream_vmem)))

    gram_kernel = functools.partial(_gram_kernel, d_total=D, tk=tk, mask_tail=mask_tail)

    gram_t, gram_s = pl.pallas_call(
        gram_kernel,
        out_shape=(jax.ShapeDtypeStruct((nc, B_pad, B_pad), jnp.float32),
                   jax.ShapeDtypeStruct((nc, B_pad, B_pad), jnp.float32)),
        grid_spec=pltpu.PrefetchScalarGridSpec(
            num_scalar_prefetch=0,
            grid=(nc, nkpc),
            in_specs=[
                # TODO(synk): raise pipeline depth (pl.Buffered(3)) here if profiling
                # still shows exposed DMA at very small B_pad.
                pl.BlockSpec((B_pad, tk), feat_map),          # teacher feature tile
                pl.BlockSpec((B_pad, tk), feat_map),          # student feature tile
            ],
            out_specs=[
                pl.BlockSpec((1, B_pad, B_pad), lambda c, k: (c, 0, 0)),  # teacher Gram
                pl.BlockSpec((1, B_pad, B_pad), lambda c, k: (c, 0, 0)),  # student Gram
            ],
        ),
        compiler_params=pltpu.CompilerParams(
            dimension_semantics=("parallel", "arbitrary"),
            vmem_limit_bytes=stream_vmem_limit),
    )(t_flat, s_flat)

    # ---- tiny finalize kernel: reduce partial Grams, normalize, SPKD + KL + CE.
    logit_itemsize = jnp.dtype(s_logits.dtype).itemsize
    fin_bytes = (2 * 2 * nc * B_pad * B_pad * 4
                 + 2 * 2 * B_pad * C * logit_itemsize
                 + 2 * B_pad * 4)
    fin_vmem_limit = int(min(max(2 * fin_bytes, 32 * 1024 * 1024),
                             max(vmem_ceiling, 2 * fin_bytes)))

    fin_kernel = functools.partial(_finalize_kernel, n_valid=B,
                                   batchmean=(reduction == 'batchmean'))

    out = pl.pallas_call(
        fin_kernel,
        out_shape=jax.ShapeDtypeStruct((1, 1), jnp.float32),
        grid_spec=pltpu.PrefetchScalarGridSpec(
            num_scalar_prefetch=0,
            grid=(1,),
            in_specs=[
                pl.BlockSpec((nc, B_pad, B_pad), lambda i: (0, 0, 0)),
                pl.BlockSpec((nc, B_pad, B_pad), lambda i: (0, 0, 0)),
                pl.BlockSpec((B_pad, C), lambda i: (0, 0)),   # student logits
                pl.BlockSpec((B_pad, C), lambda i: (0, 0)),   # teacher logits
                pl.BlockSpec((B_pad, 1), lambda i: (0, 0)),   # int32 targets
            ],
            out_specs=pl.BlockSpec(memory_space=pltpu.MemorySpace.SMEM),
        ),
        compiler_params=pltpu.CompilerParams(
            dimension_semantics=("arbitrary",),
            vmem_limit_bytes=fin_vmem_limit),
    )(gram_t, gram_s, s_logits, t_logits, tgt)
    return out[0, 0]


def reference_loss(student_feature_map, teacher_feature_map, student_output,
                   teacher_output, targets, reduction='batchmean'):
    """Pure-JAX reference mirroring the PyTorch module."""
    B = teacher_feature_map.shape[0]

    def gram_l1(z):
        z = z.reshape(B, -1).astype(jnp.float32)
        g = z @ z.T
        return g / jnp.maximum(jnp.sum(jnp.abs(g), axis=1, keepdims=True), EPS)

    spkd = jnp.sum((gram_l1(teacher_feature_map) - gram_l1(student_feature_map)) ** 2)
    if reduction == 'batchmean':
        spkd = spkd / B ** 2

    T = TEMPERATURE
    log_q = jax.nn.log_softmax(student_output / T, axis=1)
    p = jax.nn.softmax(teacher_output / T, axis=1)
    kl = jnp.sum(p * (jnp.log(p) - log_q))
    if reduction == 'batchmean':
        kl = kl / B

    log_sm = jax.nn.log_softmax(student_output, axis=1)
    ce = -jnp.mean(jnp.take_along_axis(log_sm, targets[:, None], axis=1))
    return ce + spkd + T * T * kl


if __name__ == "__main__":
    key = jax.random.PRNGKey(0)
    k1, k2, k3, k4, k5 = jax.random.split(key, 5)

    B, C, H, W = 2, 4, 16, 16
    NUM_CLASSES = 32

    student_feature_map = jax.random.normal(k1, (B, C, H, W), dtype=jnp.float32)
    teacher_feature_map = jax.random.normal(k2, (B, C, H, W), dtype=jnp.float32)
    student_output = jax.random.normal(k3, (B, NUM_CLASSES), dtype=jnp.float32)
    teacher_output = jax.random.normal(k4, (B, NUM_CLASSES), dtype=jnp.float32)
    targets = jax.random.randint(k5, (B,), 0, NUM_CLASSES)

    loss = spkd_loss(student_feature_map, teacher_feature_map,
                     student_output, teacher_output, targets,
                     reduction='batchmean')
    loss = jax.block_until_ready(loss)

    ref = reference_loss(student_feature_map, teacher_feature_map,
                         student_output, teacher_output, targets,
                         reduction='batchmean')
    ref = jax.block_until_ready(ref)

    assert bool(jnp.isfinite(loss)), "kernel produced non-finite loss"
    assert abs(float(loss) - float(ref)) <= 5e-2 * max(1.0, abs(float(ref))), (
        f"mismatch: kernel={float(loss)} ref={float(ref)}")

    print("KERNEL_OK")
</pallas_src>

<mosaic_0001>
module attributes {stable_mosaic.version = 11 : i64} {
  func.func @_gram_kernel(%arg0: i32, %arg1: i32, %arg2: memref<8x1024xf32, #tpu.memory_space<vmem>>, %arg3: memref<8x1024xf32, #tpu.memory_space<vmem>>, %arg4: memref<1x8x8xf32, #tpu.memory_space<vmem>>, %arg5: memref<1x8x8xf32, #tpu.memory_space<vmem>>) attributes {dimension_semantics = [#tpu.dimension_semantics<parallel>, #tpu.dimension_semantics<arbitrary>], iteration_bounds = array<i64: 1, 1>, scalar_prefetch = 0 : i64, scratch_operands = 0 : i64, tpu.core_type = #tpu.core_type<tc>, window_params = [{transform_indices = @transform_0, window_bounds = array<i64: 8, 1024>}, {transform_indices = @transform_1, window_bounds = array<i64: 8, 1024>}, {transform_indices = @transform_2, window_bounds = array<i64: 1, 8, 8>}, {transform_indices = @transform_3, window_bounds = array<i64: 1, 8, 8>}]} {
    %c0_i32 = arith.constant 0 : i32
    %0 = arith.cmpi eq, %arg1, %c0_i32 : i32
    %1 = arith.extui %0 : i1 to i32
    %c0_i32_0 = arith.constant 0 : i32
    %2 = arith.cmpi ne, %1, %c0_i32_0 : i32
    scf.if %2 {
      %cst_17 = arith.constant 0.000000e+00 : f32
      %21 = vector.broadcast %cst_17 : f32 to vector<1x8x8xf32>
      %c0_18 = arith.constant 0 : index
      %c0_19 = arith.constant 0 : index
      %c0_20 = arith.constant 0 : index
      %22 = vector.load %arg4[%c0_18, %c0_19, %c0_20] : memref<1x8x8xf32, #tpu.memory_space<vmem>>, vector<1x8x8xf32>
      tpu.vector_store %arg4[%c0_18, %c0_19, %c0_20], %21 {strides = array<i32>} : memref<1x8x8xf32, #tpu.memory_space<vmem>>, vector<1x8x8xf32>,
      %cst_21 = arith.constant 0.000000e+00 : f32
      %23 = vector.broadcast %cst_21 : f32 to vector<1x8x8xf32>
      %c0_22 = arith.constant 0 : index
      %c0_23 = arith.constant 0 : index
      %c0_24 = arith.constant 0 : index
      %24 = vector.load %arg5[%c0_22, %c0_23, %c0_24] : memref<1x8x8xf32, #tpu.memory_space<vmem>>, vector<1x8x8xf32>
      tpu.vector_store %arg5[%c0_22, %c0_23, %c0_24], %23 {strides = array<i32>} : memref<1x8x8xf32, #tpu.memory_space<vmem>>, vector<1x8x8xf32>,
    } else {
    }
    %c0 = arith.constant 0 : index
    %c0_1 = arith.constant 0 : index
    %3 = vector.load %arg2[%c0, %c0_1] : memref<8x1024xf32, #tpu.memory_space<vmem>>, vector<8x1024xf32>
    %c0_2 = arith.constant 0 : index
    %c0_3 = arith.constant 0 : index
    %4 = vector.load %arg3[%c0_2, %c0_3] : memref<8x1024xf32, #tpu.memory_space<vmem>>, vector<8x1024xf32>
    %5 = arith.truncf %3 : vector<8x1024xf32> to vector<8x1024xbf16>
    %6 = arith.truncf %4 : vector<8x1024xf32> to vector<8x1024xbf16>
    %c0_4 = arith.constant 0 : index
    %c0_5 = arith.constant 0 : index
    %c0_6 = arith.constant 0 : index
    %7 = vector.load %arg4[%c0_4, %c0_5, %c0_6] : memref<1x8x8xf32, #tpu.memory_space<vmem>>, vector<1x8x8xf32>
    %8 = vector.shape_cast %7 : vector<1x8x8xf32> to vector<8x8xf32>
    %cst = arith.constant dense<0.000000e+00> : vector<8x8xf32>
    %9 = tpu.matmul %5, %5, %cst {dimension_numbers = #tpu.dot_dimension_numbers<[1], [1], [0], [0], [0, 0, 1, 0], [], []>} : vector<8x1024xbf16>, vector<8x1024xbf16>, vector<8x8xf32> -> vector<8x8xf32>
    %10 = arith.addf %8, %9 : vector<8x8xf32>
    %c0_7 = arith.constant 0 : index
    %c0_8 = arith.constant 0 : index
    %c0_9 = arith.constant 0 : index
    %11 = vector.load %arg4[%c0_7, %c0_8, %c0_9] : memref<1x8x8xf32, #tpu.memory_space<vmem>>, vector<1x8x8xf32>
    %12 = vector.shape_cast %11 : vector<1x8x8xf32> to vector<8x8xf32>
    %13 = vector.shape_cast %10 : vector<8x8xf32> to vector<1x8x8xf32>
    tpu.vector_store %arg4[%c0_7, %c0_8, %c0_9], %13 {strides = array<i32>} : memref<1x8x8xf32, #tpu.memory_space<vmem>>, vector<1x8x8xf32>,
    %c0_10 = arith.constant 0 : index
    %c0_11 = arith.constant 0 : index
    %c0_12 = arith.constant 0 : index
    %14 = vector.load %arg5[%c0_10, %c0_11, %c0_12] : memref<1x8x8xf32, #tpu.memory_space<vmem>>, vector<1x8x8xf32>
    %15 = vector.shape_cast %14 : vector<1x8x8xf32> to vector<8x8xf32>
    %cst_13 = arith.constant dense<0.000000e+00> : vector<8x8xf32>
    %16 = tpu.matmul %6, %6, %cst_13 {dimension_numbers = #tpu.dot_dimension_numbers<[1], [1], [0], [0], [0, 0, 1, 0], [], []>} : vector<8x1024xbf16>, vector<8x1024xbf16>, vector<8x8xf32> -> vector<8x8xf32>
    %17 = arith.addf %15, %16 : vector<8x8xf32>
    %c0_14 = arith.constant 0 : index
    %c0_15 = arith.constant 0 : index
    %c0_16 = arith.constant 0 : index
    %18 = vector.load %arg5[%c0_14, %c0_15, %c0_16] : memref<1x8x8xf32, #tpu.memory_space<vmem>>, vector<1x8x8xf32>
    %19 = vector.shape_cast %18 : vector<1x8x8xf32> to vector<8x8xf32>
    %20 = vector.shape_cast %17 : vector<8x8xf32> to vector<1x8x8xf32>
    tpu.vector_store %arg5[%c0_14, %c0_15, %c0_16], %20 {strides = array<i32>} : memref<1x8x8xf32, #tpu.memory_space<vmem>>, vector<1x8x8xf32>,
    return
  }
  func.func @transform_0(%arg0: i32, %arg1: i32) -> (i32, i32) {
    %c1_i32 = arith.constant 1 : i32
    %0 = arith.muli %arg0, %c1_i32 : i32
    %1 = arith.addi %0, %arg1 : i32
    %c0_i32 = arith.constant 0 : i32
    %c0_i32_0 = arith.constant 0 : i32
    return %c0_i32, %1 : i32, i32
  }
  func.func @transform_1(%arg0: i32, %arg1: i32) -> (i32, i32) {
    %c1_i32 = arith.constant 1 : i32
    %0 = arith.muli %arg0, %c1_i32 : i32
    %1 = arith.addi %0, %arg1 : i32
    %c0_i32 = arith.constant 0 : i32
    %c0_i32_0 = arith.constant 0 : i32
    return %c0_i32, %1 : i32, i32
  }
  func.func @transform_2(%arg0: i32, %arg1: i32) -> (i32, i32, i32) {
    %c0_i32 = arith.constant 0 : i32
    %c0_i32_0 = arith.constant 0 : i32
    %c0_i32_1 = arith.constant 0 : i32
    return %arg0, %c0_i32, %c0_i32_0 : i32, i32, i32
  }
  func.func @transform_3(%arg0: i32, %arg1: i32) -> (i32, i32, i32) {
    %c0_i32 = arith.constant 0 : i32
    %c0_i32_0 = arith.constant 0 : i32
    %c0_i32_1 = arith.constant 0 : i32
    return %arg0, %c0_i32, %c0_i32_0 : i32, i32, i32
  }
}

</mosaic_0001>

<bundles_post_ra>
// kernel: tpu_custom_call.1
= control target key start
LH: loop header
LB: loop body
LE: loop exit
PB: predicated region body
PF: predicated region fallthrough
CT: control target
= control target key end

     0   :  { %9 = vsyncpa [#allocation3], 0  ;;  %s626_s0 = inlined_call_operand.hbm [shape: f32[8,1024], index: 0, kind: input, shape index: {}]   ;;  %s627_s1 = inlined_call_operand.hbm [shape: f32[8,1024], index: 1, kind: input, shape index: {}]   ;;  %s628_s2 = inlined_call_operand.hbm [shape: f32[1,8,8], index: 2, kind: output, shape index: {0}]   ;;  %s629_s3 = inlined_call_operand.hbm [shape: f32[1,8,8], index: 3, kind: output, shape index: {1}]  }
   0x1   :  { %10 = vsyncpa [#allocation6], 0 }
   0x2   :  { %11 = vsyncpa [#allocation4], 0 }
   0x3   :  { %12 = vsyncpa [#allocation9], 0  ;;  %s549_s12 = smov [#allocation2]   ;;  %s550_s14 = smov [#allocation5]  }
   0x4   :  { %s23_s13 = sshll.u32 %s549_s12, 4  ;;  %s37_s15 = sshll.u32 %s550_s14, 4  ;;  %s24_s13 = int_to_ptr.vmem [resolvable:$true] %s23_s13  ;;  %s38_s15 = int_to_ptr.vmem [resolvable:$true] %s37_s15 }
   0x5   :  { %s453_s18 = scalar_lea.hbm %s626_s0, 1024 }
   0x6   :  { %p454_p0 = scmp.ne.s32.totalorder %s626_s0, %s453_s18  ;;  %p457_p1 = scmp.lt.u32.totalorder %s453_s18, %s626_s0 }
   0x8   :  { %p459_p2 = pnand %p457_p1, %p454_p0 }
   0xa   :  { %462 = shalt.err (!%p459_p2)
}
   0xb   :  { %s463_s23 = scalar_lea.vmem %s24_s13, 1024  ;;  %p468_p4 = scmp.lt.s32.totalorder %s24_s13, %s24_s13 }
   0xc   :  { %p464_p3 = scmp.ne.s32.totalorder %s24_s13, %s463_s23  ;;  %p469_p5 = scmp.lt.s32.totalorder %s463_s23, %s463_s23 }
   0xe   :  { %p470_p6 = por %p469_p5, %p468_p4 }
  0x10   :  { %p471_p7 = pnand %p470_p6, %p464_p3 }
  0x12   :  { %474 = shalt.err (!%p471_p7)
}
  0x13   :  { %26 = dma.hbm_to_vmem [thread:$0]  %s626_s0, 1024, %s24_s13, [#allocation3]  }
  0x14   :  { %s475_s28 = scalar_lea.hbm %s627_s1, 1024 }
  0x15   :  { %p476_p8 = scmp.ne.s32.totalorder %s627_s1, %s475_s28  ;;  %p479_p9 = scmp.lt.u32.totalorder %s475_s28, %s627_s1 }
  0x17   :  { %p481_p10 = pnand %p479_p9, %p476_p8 }
  0x19   :  { %484 = shalt.err (!%p481_p10)
}
  0x1a   :  { %s485_s6 = scalar_lea.vmem %s38_s15, 1024  ;;  %p490_p12 = scmp.lt.s32.totalorder %s38_s15, %s38_s15 }
  0x1b   :  { %p486_p11 = scmp.ne.s32.totalorder %s38_s15, %s485_s6  ;;  %p491_p13 = scmp.lt.s32.totalorder %s485_s6, %s485_s6 }
  0x1d   :  { %p492_p0 = por %p491_p13, %p490_p12 }
  0x1f   :  { %p493_p1 = pnand %p492_p0, %p486_p11 }
  0x21   :  { %496 = shalt.err (!%p493_p1)
}
  0x22   :  { %40 = dma.hbm_to_vmem [thread:$0]  %s627_s1, 1024, %s38_s15, [#allocation6]  }
  0x23   :  { %541 = dma.done.wait [#allocation3], 1024  }
  0x24   :  { %542 = vsyncadd [#allocation3], 4294966272 }
  0x25   :  { %543 = dma.done.wait [#allocation6], 1024  }
  0x26   :  { %544 = vsyncadd [#allocation6], 4294966272  ;;  %v60_v0 = vld [vmem:[#allocation2 + $0x8] sm:$0xff]  ;;  %v62_v1 = vld [vmem:[#allocation2 + $0x18] sm:$0xff]  ;;  %vm56_vm0 = vcmask 64512   ;;  %v551_v32 = vmov 0.0  }
  0x27   :  { %v59_v2 = vld [vmem:[#allocation2] sm:$0xff]  ;;  %v76_v3 = vpack.c.bf16 %v60_v0, %v60_v0  ;;  %v78_v4 = vpack.c.bf16 %v62_v1, %v62_v1  ;;  %v61_v6 = vld [vmem:[#allocation2 + $0x10] sm:$0xff]  ;;  %v64_v7 = vld [vmem:[#allocation2 + $0x28] sm:$0xff]  ;;  %57 = vst.msk [vmem:[#allocation7] sm:$0xff] %vm56_vm0, %v551_v32  ;;  %s552_s1 = smov [#allocation7]  }
  0x28   :  { %v75_v5 = vpack.c.bf16 %v59_v2, %v59_v2  ;;  %v66_v8 = vld [vmem:[#allocation2 + $0x38] sm:$0xff]  ;;  %v77_v9 = vpack.c.bf16 %v61_v6, %v61_v6  ;;  %v80_v10 = vpack.c.bf16 %v64_v7, %v64_v7  ;;  %v63_v12 = vld [vmem:[#allocation2 + $0x20] sm:$0xff]  ;;  %v65_v13 = vld [vmem:[#allocation2 + $0x30] sm:$0xff]  ;;  %58 = vst.msk [vmem:[#allocation8] sm:$0xff] %vm56_vm0, %v551_v32  ;;  %s424_s8 = sshll.u32 %s552_s1, 4  ;;  %s425_s8 = int_to_ptr.vmem [resolvable:$true] %s424_s8 }
  0x29   :  { %v82_v11 = vpack.c.bf16 %v66_v8, %v66_v8  ;;  %92 = vmatprep.subr.bf16.mxu0 %v76_v3  ;;  %132 = vmatprep.subr.bf16.mxu1 %v78_v4  ;;  %v68_v14 = vld [vmem:[#allocation5 + $0x8] sm:$0xff]  ;;  %v70_v15 = vld [vmem:[#allocation5 + $0x18] sm:$0xff]  ;;  %v79_v16 = vpack.c.bf16 %v63_v12, %v63_v12  ;;  %v81_v17 = vpack.c.bf16 %v65_v13, %v65_v13  ;;  %v67_v20 = vld [vmem:[#allocation5] sm:$0xff]  ;;  %s497_s9 = scalar_lea.vmem %s425_s8, 128  ;;  %p502_p3 = scmp.lt.s32.totalorder %s425_s8, %s425_s8 }
  0x2a   :  { %93 = vmatpush1.bf16.xpose.msra.mxu0 %v75_v5  ;;  %133 = vmatpush1.bf16.xpose.msra.mxu1 %v77_v9  ;;  %v84_v18 = vpack.c.bf16 %v68_v14, %v68_v14  ;;  %v86_v19 = vpack.c.bf16 %v70_v15, %v70_v15  ;;  %v69_v21 = vld [vmem:[#allocation5 + $0x10] sm:$0xff]  ;;  %v72_v22 = vld [vmem:[#allocation5 + $0x28] sm:$0xff]  ;;  %v74_v23 = vld [vmem:[#allocation5 + $0x38] sm:$0xff]  ;;  %v83_v24 = vpack.c.bf16 %v67_v20, %v67_v20  ;;  %p498_p2 = scmp.ne.s32.totalorder %s425_s8, %s497_s9  ;;  %p503_p4 = scmp.lt.s32.totalorder %s497_s9, %s497_s9 }
  0x2b   :  { %124 = vmatprep.mubr.bf16.mxu0 %v76_v3  ;;  %164 = vmatprep.mubr.bf16.mxu1 %v78_v4  ;;  %v85_v25 = vpack.c.bf16 %v69_v21, %v69_v21  ;;  %v88_v26 = vpack.c.bf16 %v72_v22, %v72_v22  ;;  %v90_v27 = vpack.c.bf16 %v74_v23, %v74_v23  ;;  %v71_v28 = vld [vmem:[#allocation5 + $0x20] sm:$0xff]  ;;  %v73_v29 = vld [vmem:[#allocation5 + $0x30] sm:$0xff] }
  0x2c   :  { %172 = vmatprep.subr.bf16.mxu0 %v80_v10  ;;  %212 = vmatprep.subr.bf16.mxu1 %v82_v11  ;;  %v87_v30 = vpack.c.bf16 %v71_v28, %v71_v28  ;;  %v89_v31 = vpack.c.bf16 %v73_v29, %v73_v29  ;;  %p504_p5 = por %p503_p4, %p502_p3 }
  0x2e   :  { %v91_v47 = vld [vmem:[#allocation7] sm:$0xff]  ;;  %p505_p6 = pnand %p504_p5, %p498_p2 }
  0x31   :  { %125 = vmatmul.mubr.bf16.vlgmr.msra.gmra.mrb[0].mxu0 %v75_v5  ;;  %165 = vmatmul.mubr.bf16.vlgmr.msra.gmra.mrb[0].mxu1 %v77_v9 }
  0x32   :  { %173 = vmatpush1.bf16.xpose.msra.mxu0 %v79_v16  ;;  %213 = vmatpush1.bf16.xpose.msra.mxu1 %v81_v17 }
  0x33   :  { %204 = vmatprep.mubr.bf16.mxu0 %v80_v10  ;;  %244 = vmatprep.mubr.bf16.mxu1 %v82_v11 }
  0x34   :  { %256 = vmatprep.subr.bf16.mxu0 %v84_v18  ;;  %296 = vmatprep.subr.bf16.mxu1 %v86_v19 }
  0x39   :  { %205 = vmatmul.mubr.bf16.vlgmr.msra.gmra.mrb[4].mxu0 %v79_v16  ;;  %245 = vmatmul.mubr.bf16.vlgmr.msra.gmra.mrb[4].mxu1 %v81_v17 }
  0x3a   :  { %257 = vmatpush1.bf16.xpose.msra.mxu0 %v83_v24  ;;  %297 = vmatpush1.bf16.xpose.msra.mxu1 %v85_v25 }
  0x3b   :  { %288 = vmatprep.mubr.bf16.mxu0 %v84_v18  ;;  %328 = vmatprep.mubr.bf16.mxu1 %v86_v19 }
  0x3c   :  { %336 = vmatprep.subr.bf16.mxu0 %v88_v26  ;;  %376 = vmatprep.subr.bf16.mxu1 %v90_v27 }
  0x41   :  { %289 = vmatmul.mubr.bf16.vlgmr.msra.gmra.mrb[8].mxu0 %v83_v24  ;;  %329 = vmatmul.mubr.bf16.vlgmr.msra.gmra.mrb[8].mxu1 %v85_v25 }
  0x42   :  { %337 = vmatpush1.bf16.xpose.msra.mxu0 %v87_v30  ;;  %377 = vmatpush1.bf16.xpose.msra.mxu1 %v89_v31 }
  0x43   :  { %368 = vmatprep.mubr.bf16.mxu0 %v88_v26  ;;  %408 = vmatprep.mubr.bf16.mxu1 %v90_v27 }
  0x49   :  { %369 = vmatmul.mubr.bf16.vlgmr.msra.gmra.mrb[12].mxu0 %v87_v30  ;;  %409 = vmatmul.mubr.bf16.vlgmr.msra.gmra.mrb[12].mxu1 %v89_v31 }
 0x104   :  { %v126_v33 = vpop.f32.mrb[0].mxu0  ;;  %v166_v34 = vpop.f32.mrb[0].mxu1 }
 0x105   :  { %v167_v35 = vadd.f32 %v166_v34, %v126_v33  ;;  %v128_v36 = vpop.f32.mrb[1].mxu0  ;;  %v168_v37 = vpop.f32.mrb[1].mxu1 }
 0x106   :  { %v129_v38 = vpop.f32.mrb[2].mxu0  ;;  %v169_v39 = vpop.f32.mrb[2].mxu1 }
 0x107   :  { %v130_v40 = vpop.f32.mrb[3].mxu0  ;;  %v170_v41 = vpop.f32.mrb[3].mxu1 }
 0x10c   :  { %v206_v42 = vpop.f32.mrb[4].mxu0  ;;  %v246_v43 = vpop.f32.mrb[4].mxu1 }
 0x10d   :  { %v207_v44 = vadd.f32 %v206_v42, %v167_v35  ;;  %v208_v45 = vpop.f32.mrb[5].mxu0  ;;  %v248_v46 = vpop.f32.mrb[5].mxu1 }
 0x10e   :  { %v209_v48 = vpop.f32.mrb[6].mxu0  ;;  %v249_v49 = vpop.f32.mrb[6].mxu1 }
 0x10f   :  { %v247_v50 = vadd.f32 %v246_v43, %v207_v44  ;;  %v210_v51 = vpop.f32.mrb[7].mxu0  ;;  %v250_v52 = vpop.f32.mrb[7].mxu1 }
 0x111   :  { %v252_v53 = vadd.f32 %v247_v50, %v91_v47 }
 0x113   :  { %254 = vst.msk [vmem:[#allocation7] sm:$0xff] %vm56_vm0, %v252_v53 }
 0x114   :  { %v290_v54 = vpop.f32.mrb[8].mxu0  ;;  %v330_v55 = vpop.f32.mrb[8].mxu1 }
 0x115   :  { %508 = shalt.err (!%p505_p6)
}
 0x116   :  { %s509_s12 = scalar_lea.hbm %s628_s2, 128 }
 0x117   :  { %p510_p7 = scmp.ne.s32.totalorder %s628_s2, %s509_s12  ;;  %p513_p8 = scmp.lt.u32.totalorder %s509_s12, %s628_s2 }
 0x119   :  { %p515_p9 = pnand %p513_p8, %p510_p7 }
 0x11b   :  { %518 = shalt.err (!%p515_p9)
}
 0x11c   :  { %427 = dma.vmem_to_hbm [thread:$0]  %s425_s8, 128, %s628_s2, [#allocation4]   ;;  %v331_v56 = vadd.f32 %v330_v55, %v290_v54  ;;  %v292_v57 = vpop.f32.mrb[9].mxu0  ;;  %v332_v58 = vpop.f32.mrb[9].mxu1  ;;  %v255_v4 = vld [vmem:[#allocation8] sm:$0xff] }
 0x11d   :  { %v293_v59 = vpop.f32.mrb[10].mxu0  ;;  %v333_v60 = vpop.f32.mrb[10].mxu1  ;;  %s553_s19 = smov [#allocation8]  }
 0x11e   :  { %v294_v61 = vpop.f32.mrb[11].mxu0  ;;  %v334_v62 = vpop.f32.mrb[11].mxu1  ;;  %s434_s20 = sshll.u32 %s553_s19, 4  ;;  %s435_s20 = int_to_ptr.vmem [resolvable:$true] %s434_s20 }
 0x11f   :  { %v370_v63 = vpop.f32.mrb[12].mxu0  ;;  %v410_v0 = vpop.f32.mrb[12].mxu1  ;;  %s519_s2 = scalar_lea.vmem %s435_s20, 128  ;;  %p524_p11 = scmp.lt.s32.totalorder %s435_s20, %s435_s20 }
 0x120   :  { %v371_v1 = vadd.f32 %v370_v63, %v331_v56  ;;  %v372_v2 = vpop.f32.mrb[13].mxu0  ;;  %v412_v3 = vpop.f32.mrb[13].mxu1  ;;  %p520_p10 = scmp.ne.s32.totalorder %s435_s20, %s519_s2  ;;  %p525_p12 = scmp.lt.s32.totalorder %s519_s2, %s519_s2 }
 0x121   :  { %v373_v5 = vpop.f32.mrb[14].mxu0  ;;  %v413_v6 = vpop.f32.mrb[14].mxu1 }
 0x122   :  { %v411_v7 = vadd.f32 %v410_v0, %v371_v1  ;;  %v374_v8 = vpop.f32.mrb[15].mxu0  ;;  %v414_v9 = vpop.f32.mrb[15].mxu1  ;;  %p526_p13 = por %p525_p12, %p524_p11 }
 0x124   :  { %v416_v10 = vadd.f32 %v411_v7, %v255_v4  ;;  %p527_p0 = pnand %p526_p13, %p520_p10 }
 0x126   :  { %417 = vst.msk [vmem:[#allocation8] sm:$0xff] %vm56_vm0, %v416_v10 }
 0x127   :  { %530 = shalt.err (!%p527_p0)
}
 0x128   :  { %s531_s23 = scalar_lea.hbm %s629_s3, 128 }
 0x129   :  { %p532_p1 = scmp.ne.s32.totalorder %s629_s3, %s531_s23  ;;  %p535_p2 = scmp.lt.u32.totalorder %s531_s23, %s629_s3 }
 0x12b   :  { %p537_p3 = pnand %p535_p2, %p532_p1 }
 0x12d   :  { %540 = shalt.err (!%p537_p3)
}
 0x12e   :  { %437 = dma.vmem_to_hbm [thread:$0]  %s435_s20, 128, %s629_s3, [#allocation9]  }
 0x12f   :  { %545 = dma.done.wait [#allocation4], 128  }
 0x130   :  { %546 = vsyncadd [#allocation4], 4294967168 }
 0x131   :  { %547 = dma.done.wait [#allocation9], 128  }
 0x132   :  { %548 = vsyncadd [#allocation9], 4294967168 }
 0x133   :  { %444 = vsyncpa [#allocation3], 1 }
 0x134   :  { %445 = vsyncpa [#allocation6], 1 }
 0x135   :  { %446 = vsyncpa [#allocation4], 1 }
 0x136   :  { %447 = vsyncpa [#allocation9], 1 }

</bundles_post_ra>
